<compile_context>
chip_gen: v7x
topology: tpu7x:2x2x1
jax: 0.10.0
libtpu: 0.0.40
codegen_flags: <defaults>
</compile_context>

<pallas_src>
import jax
import jax.numpy as jnp
from jax.experimental import pallas as pl
from jax.experimental.pallas import tpu as pltpu

LANE = 128            # lane width (last dim)
MAX_TILE_ROWS = 8192  # 4 MiB f32 / 2 MiB bf16 per input block; mult. of 8/16/32


def _sse_kernel(p_ref, l_ref, out_ref):
    """Accumulate sum((p-l)^2) folded into an (8, LANE) f32 partial.

    grid = (num_chunks, tiles_per_chunk): axis 0 ("parallel") splits the row
    stream across TensorCores, axis 1 ("arbitrary") is the reduction over row
    tiles.  out_ref is the revisited (8, LANE) f32 block for this chunk; the
    tiny lane/sublane finish (sum, sqrt, mean over keys) happens in plain JAX.
    """
    @pl.when(pl.program_id(1) == 0)
    def _():
        out_ref[...] = jnp.zeros_like(out_ref)

    d = p_ref[...].astype(jnp.float32) - l_ref[...].astype(jnp.float32)
    d2 = d * d
    # Fold row-blocks of 8 into one vreg-shaped partial: pure VALU adds
    # (leading-axis reduce, no cross-lane/sublane movement).
    out_ref[...] += jnp.sum(d2.reshape(-1, 8, LANE), axis=0)


def _round_up(x, m):
    return ((x + m - 1) // m) * m


def _cdiv(a, b):
    return -(-a // b)


def _per_key_sse(pred, label):
    """Per-key sum of squared errors via the streaming Pallas kernel (f32)."""
    dtype = jnp.promote_types(pred.dtype, label.dtype)
    p = pred.astype(dtype).reshape(-1)
    l = label.astype(dtype).reshape(-1)
    n = int(p.size)

    itemsize = jnp.dtype(dtype).itemsize
    row_align = max(8, 32 // itemsize)          # f32 -> 8, bf16 -> 16, int8 -> 32
    rows = _round_up(_cdiv(n, LANE), row_align)

    if rows <= MAX_TILE_ROWS:
        tile_rows, num_chunks, tiles_per_chunk = rows, 1, 1
    else:
        tile_rows = MAX_TILE_ROWS
        total_tiles = _cdiv(rows, tile_rows)
        # Split the reduction 2-way for v7x megacore, but only when the extra
        # zero-pad stays small (even tile count, or >= 8 tiles => <= 12.5%).
        num_chunks = 2 if (total_tiles % 2 == 0 or total_tiles >= 8) else 1
        tiles_per_chunk = _cdiv(total_tiles, num_chunks)

    rows_pad = num_chunks * tiles_per_chunk * tile_rows
    pad = rows_pad * LANE - n
    if pad:
        # Identical zero pad for pred & label -> padded diffs are exactly 0.
        p = jnp.pad(p, (0, pad))
        l = jnp.pad(l, (0, pad))
    p = p.reshape(rows_pad, LANE)
    l = l.reshape(rows_pad, LANE)

    partial = pl.pallas_call(
        _sse_kernel,
        out_shape=jax.ShapeDtypeStruct((num_chunks, 8, LANE), jnp.float32),
        grid_spec=pltpu.PrefetchScalarGridSpec(
            num_scalar_prefetch=0,
            grid=(num_chunks, tiles_per_chunk),
            in_specs=[
                pl.BlockSpec((tile_rows, LANE),
                             lambda c, r: (c * tiles_per_chunk + r, 0)),
                pl.BlockSpec((tile_rows, LANE),
                             lambda c, r: (c * tiles_per_chunk + r, 0)),
            ],
            out_specs=pl.BlockSpec((None, 8, LANE), lambda c, r: (c, 0, 0)),
        ),
        compiler_params=pltpu.CompilerParams(
            dimension_semantics=("parallel", "arbitrary"),
            vmem_limit_bytes=32 * 1024 * 1024),
    )(p, l)

    return jnp.sum(partial)


def custom_rmse(predictions, labels, *, small_key_fallback_elems=65536):
    """Mirrors CustomRMSE.forward: mean over keys of per-key RMSE."""
    assert set(predictions.keys()) == set(labels.keys()), \
        "Keys of predictions and labels must match"
    keys = sorted(predictions.keys())
    assert len(keys) > 0, "need at least one key"

    rmses = []
    for k in keys:
        pred = jnp.asarray(predictions[k])
        label = jnp.asarray(labels[k])
        assert pred.shape == label.shape, \
            f"pred/label shapes must match for key {k}"
        n = int(pred.size)
        assert n > 0, f"empty tensor for key {k}"

        if n < small_key_fallback_elems:
            # Tiny key: pallas launch + pipeline warm-up would dominate.
            d = pred.astype(jnp.float32) - label.astype(jnp.float32)
            rmses.append(jnp.sqrt(jnp.mean(d * d)))
        else:
            sse = _per_key_sse(pred, label)
            rmses.append(jnp.sqrt(sse / jnp.float32(n)))

    return jnp.mean(jnp.stack(rmses))


if __name__ == "__main__":
    key = jax.random.PRNGKey(0)
    # Small shapes consistent with the module: dict of (batch, window, dim) tensors.
    shapes = {
        "out_a": (2, 8, 16),
        "out_b": (2, 8, 16),
        "out_c": (2, 4, 32),
    }
    preds, labels = {}, {}
    for name, shp in shapes.items():
        key, k1, k2 = jax.random.split(key, 3)
        preds[name] = jax.random.normal(k1, shp, dtype=jnp.float32)
        labels[name] = jax.random.normal(k2, shp, dtype=jnp.float32)

    # Force the Pallas path even for these small demo tensors.
    loss = custom_rmse(preds, labels, small_key_fallback_elems=0)
    loss = jax.block_until_ready(loss)

    # Pure-JAX reference of the same semantics.
    ref_losses = [jnp.sqrt(jnp.mean((preds[k] - labels[k]) ** 2))
                  for k in sorted(preds.keys())]
    ref = jnp.mean(jnp.stack(ref_losses))
    if not jnp.allclose(loss, ref, rtol=1e-5, atol=1e-6):
        raise AssertionError(f"mismatch: kernel={loss} ref={ref}")

    print("KERNEL_OK")
</pallas_src>

<mosaic_0001>
module attributes {stable_mosaic.version = 11 : i64} {
  func.func @_sse_kernel(%arg0: i32, %arg1: i32, %arg2: memref<8x128xf32, #tpu.memory_space<vmem>>, %arg3: memref<8x128xf32, #tpu.memory_space<vmem>>, %arg4: memref<1x8x128xf32, #tpu.memory_space<vmem>>) attributes {dimension_semantics = [#tpu.dimension_semantics<parallel>, #tpu.dimension_semantics<arbitrary>], iteration_bounds = array<i64: 1, 1>, scalar_prefetch = 0 : i64, scratch_operands = 0 : i64, tpu.core_type = #tpu.core_type<tc>, window_params = [{transform_indices = @transform_0, window_bounds = array<i64: 8, 128>}, {transform_indices = @transform_1, window_bounds = array<i64: 8, 128>}, {transform_indices = @transform_2, window_bounds = array<i64: 1, 8, 128>}]} {
    %c0_i32 = arith.constant 0 : i32
    %0 = arith.cmpi eq, %arg1, %c0_i32 : i32
    %1 = arith.extui %0 : i1 to i32
    %c0_i32_0 = arith.constant 0 : i32
    %2 = arith.cmpi ne, %1, %c0_i32_0 : i32
    scf.if %2 {
      %cst_10 = arith.constant 0.000000e+00 : f32
      %15 = vector.broadcast %cst_10 : f32 to vector<8x128xf32>
      %c0_11 = arith.constant 0 : index
      %c0_12 = arith.constant 0 : index
      %c0_13 = arith.constant 0 : index
      %16 = vector.load %arg4[%c0_11, %c0_12, %c0_13] : memref<1x8x128xf32, #tpu.memory_space<vmem>>, vector<1x8x128xf32>
      %17 = vector.shape_cast %16 : vector<1x8x128xf32> to vector<8x128xf32>
      %18 = vector.shape_cast %15 : vector<8x128xf32> to vector<1x8x128xf32>
      tpu.vector_store %arg4[%c0_11, %c0_12, %c0_13], %18 {strides = array<i32>} : memref<1x8x128xf32, #tpu.memory_space<vmem>>, vector<1x8x128xf32>,
    } else {
    }
    %c0 = arith.constant 0 : index
    %c0_1 = arith.constant 0 : index
    %3 = vector.load %arg2[%c0, %c0_1] : memref<8x128xf32, #tpu.memory_space<vmem>>, vector<8x128xf32>
    %c0_2 = arith.constant 0 : index
    %c0_3 = arith.constant 0 : index
    %4 = vector.load %arg3[%c0_2, %c0_3] : memref<8x128xf32, #tpu.memory_space<vmem>>, vector<8x128xf32>
    %5 = arith.subf %3, %4 : vector<8x128xf32>
    %6 = arith.mulf %5, %5 : vector<8x128xf32>
    %c0_4 = arith.constant 0 : index
    %c0_5 = arith.constant 0 : index
    %c0_6 = arith.constant 0 : index
    %7 = vector.load %arg4[%c0_4, %c0_5, %c0_6] : memref<1x8x128xf32, #tpu.memory_space<vmem>>, vector<1x8x128xf32>
    %8 = vector.shape_cast %7 : vector<1x8x128xf32> to vector<8x128xf32>
    %9 = vector.shape_cast %6 : vector<8x128xf32> to vector<1x8x128xf32>
    %cst = arith.constant dense<0.000000e+00> : vector<8x128xf32>
    %10 = vector.multi_reduction <add>, %9, %cst [0] : vector<1x8x128xf32> to vector<8x128xf32>
    %11 = arith.addf %8, %10 : vector<8x128xf32>
    %c0_7 = arith.constant 0 : index
    %c0_8 = arith.constant 0 : index
    %c0_9 = arith.constant 0 : index
    %12 = vector.load %arg4[%c0_7, %c0_8, %c0_9] : memref<1x8x128xf32, #tpu.memory_space<vmem>>, vector<1x8x128xf32>
    %13 = vector.shape_cast %12 : vector<1x8x128xf32> to vector<8x128xf32>
    %14 = vector.shape_cast %11 : vector<8x128xf32> to vector<1x8x128xf32>
    tpu.vector_store %arg4[%c0_7, %c0_8, %c0_9], %14 {strides = array<i32>} : memref<1x8x128xf32, #tpu.memory_space<vmem>>, vector<1x8x128xf32>,
    return
  }
  func.func @transform_0(%arg0: i32, %arg1: i32) -> (i32, i32) {
    %c1_i32 = arith.constant 1 : i32
    %0 = arith.muli %arg0, %c1_i32 : i32
    %1 = arith.addi %0, %arg1 : i32
    %c0_i32 = arith.constant 0 : i32
    %c0_i32_0 = arith.constant 0 : i32
    return %1, %c0_i32 : i32, i32
  }
  func.func @transform_1(%arg0: i32, %arg1: i32) -> (i32, i32) {
    %c1_i32 = arith.constant 1 : i32
    %0 = arith.muli %arg0, %c1_i32 : i32
    %1 = arith.addi %0, %arg1 : i32
    %c0_i32 = arith.constant 0 : i32
    %c0_i32_0 = arith.constant 0 : i32
    return %1, %c0_i32 : i32, i32
  }
  func.func @transform_2(%arg0: i32, %arg1: i32) -> (i32, i32, i32) {
    %c0_i32 = arith.constant 0 : i32
    %c0_i32_0 = arith.constant 0 : i32
    %c0_i32_1 = arith.constant 0 : i32
    return %arg0, %c0_i32, %c0_i32_0 : i32, i32, i32
  }
}

</mosaic_0001>

<bundles_post_ra>
// kernel: tpu_custom_call.1
= control target key start
LH: loop header
LB: loop body
LE: loop exit
PB: predicated region body
PF: predicated region fallthrough
CT: control target
= control target key end

     0   :  { %7 = vsyncpa [#allocation3], 0  ;;  %s203_s0 = inlined_call_operand.hbm [shape: f32[8,128], index: 0, kind: input, shape index: {}]   ;;  %s204_s1 = inlined_call_operand.hbm [shape: f32[8,128], index: 1, kind: input, shape index: {}]   ;;  %s205_s2 = inlined_call_operand.hbm [shape: f32[1,8,128], index: 2, kind: output, shape index: {}]  }
   0x1   :  { %8 = vsyncpa [#allocation6], 0 }
   0x2   :  { %9 = vsyncpa [#allocation4], 0  ;;  %s149_s9 = smov [#allocation2]   ;;  %s150_s11 = smov [#allocation5]  }
   0x3   :  { %s19_s10 = sshll.u32 %s149_s9, 4  ;;  %s32_s12 = sshll.u32 %s150_s11, 4  ;;  %s20_s10 = int_to_ptr.vmem [resolvable:$true] %s19_s10  ;;  %s33_s12 = int_to_ptr.vmem [resolvable:$true] %s32_s12 }
   0x4   :  { %s77_s15 = scalar_lea.hbm %s203_s0, 128 }
   0x5   :  { %p78_p0 = scmp.ne.s32.totalorder %s203_s0, %s77_s15  ;;  %p81_p1 = scmp.lt.u32.totalorder %s77_s15, %s203_s0 }
   0x7   :  { %p83_p2 = pnand %p81_p1, %p78_p0 }
   0x9   :  { %86 = shalt.err (!%p83_p2)
}
   0xa   :  { %s87_s20 = scalar_lea.vmem %s20_s10, 128  ;;  %p92_p4 = scmp.lt.s32.totalorder %s20_s10, %s20_s10 }
   0xb   :  { %p88_p3 = scmp.ne.s32.totalorder %s20_s10, %s87_s20  ;;  %p93_p5 = scmp.lt.s32.totalorder %s87_s20, %s87_s20 }
   0xd   :  { %p94_p6 = por %p93_p5, %p92_p4 }
   0xf   :  { %p95_p7 = pnand %p94_p6, %p88_p3 }
  0x11   :  { %98 = shalt.err (!%p95_p7)
}
  0x12   :  { %22 = dma.hbm_to_vmem [thread:$0]  %s203_s0, 128, %s20_s10, [#allocation3]  }
  0x13   :  { %s99_s25 = scalar_lea.hbm %s204_s1, 128 }
  0x14   :  { %p100_p8 = scmp.ne.s32.totalorder %s204_s1, %s99_s25  ;;  %p103_p9 = scmp.lt.u32.totalorder %s99_s25, %s204_s1 }
  0x16   :  { %p105_p10 = pnand %p103_p9, %p100_p8 }
  0x18   :  { %108 = shalt.err (!%p105_p10)
}
  0x19   :  { %s109_s30 = scalar_lea.vmem %s33_s12, 128  ;;  %p114_p12 = scmp.lt.s32.totalorder %s33_s12, %s33_s12 }
  0x1a   :  { %p110_p11 = scmp.ne.s32.totalorder %s33_s12, %s109_s30  ;;  %p115_p13 = scmp.lt.s32.totalorder %s109_s30, %s109_s30 }
  0x1c   :  { %p116_p0 = por %p115_p13, %p114_p12 }
  0x1e   :  { %p117_p1 = pnand %p116_p0, %p110_p11 }
  0x20   :  { %120 = shalt.err (!%p117_p1)
}
  0x21   :  { %35 = dma.hbm_to_vmem [thread:$0]  %s204_s1, 128, %s33_s12, [#allocation6]  }
  0x22   :  { %143 = dma.done.wait [#allocation3], 128  }
  0x23   :  { %144 = vsyncadd [#allocation3], 4294967168 }
  0x24   :  { %145 = dma.done.wait [#allocation6], 128  }
  0x25   :  { %146 = vsyncadd [#allocation6], 4294967168  ;;  %v49_v0 = vld [vmem:[#allocation2] sm:$0xff]  ;;  %v50_v1 = vld [vmem:[#allocation5] sm:$0xff]  ;;  %s151_s4 = smov [#allocation7]  }
  0x26   :  { %v51_v2 = vsub.f32 %v49_v0, %v50_v1  ;;  %s63_s5 = sshll.u32 %s151_s4, 4  ;;  %s64_s5 = int_to_ptr.vmem [resolvable:$true] %s63_s5 }
  0x27   :  { %s121_s6 = scalar_lea.vmem %s64_s5, 128  ;;  %p126_p3 = scmp.lt.s32.totalorder %s64_s5, %s64_s5 }
  0x28   :  { %v52_v3 = vmul.f32 %v51_v2, %v51_v2  ;;  %p122_p2 = scmp.ne.s32.totalorder %s64_s5, %s121_s6  ;;  %p127_p4 = scmp.lt.s32.totalorder %s121_s6, %s121_s6 }
  0x2a   :  { %56 = vst [vmem:[#allocation7] sm:$0xff] %v52_v3  ;;  %p128_p5 = por %p127_p4, %p126_p3 }
  0x2c   :  { %p129_p6 = pnand %p128_p5, %p122_p2 }
  0x2e   :  { %132 = shalt.err (!%p129_p6)
}
  0x2f   :  { %s133_s8 = scalar_lea.hbm %s205_s2, 128 }
  0x30   :  { %p134_p7 = scmp.ne.s32.totalorder %s205_s2, %s133_s8  ;;  %p137_p8 = scmp.lt.u32.totalorder %s133_s8, %s205_s2 }
  0x32   :  { %p139_p9 = pnand %p137_p8, %p134_p7 }
  0x34   :  { %142 = shalt.err (!%p139_p9)
}
  0x35   :  { %66 = dma.vmem_to_hbm [thread:$0]  %s64_s5, 128, %s205_s2, [#allocation4]  }
  0x36   :  { %147 = dma.done.wait [#allocation4], 128  }
  0x37   :  { %148 = vsyncadd [#allocation4], 4294967168 }
  0x38   :  { %70 = vsyncpa [#allocation3], 1 }
  0x39   :  { %71 = vsyncpa [#allocation6], 1 }
  0x3a   :  { %72 = vsyncpa [#allocation4], 1 }

</bundles_post_ra>
